<compile_context>
chip_gen: v5e
topology: v5e:2x2
jax: 0.10.0
libtpu: 0.0.40
codegen_flags: <defaults>
</compile_context>

<pallas_src>
import jax
import jax.numpy as jnp
from jax.experimental import pallas as pl
from jax.experimental.pallas import tpu as pltpu


def _round_up(a, b):
    return (a + b - 1) // b * b


def residual_ff_kernel(x_ref, w1_ref, b1_ref, w2_ref, b2_ref, o_ref, acc_ref):
    # x_ref : (tm, Dp)    w1_ref: (Dp, th)   b1_ref: (1, th)
    # w2_ref: (th, Dp)    b2_ref: (1, Dp)    o_ref : (tm, Dp)
    # acc_ref: (tm, Dp) f32 scratch, persists across the hidden grid axis.
    h_idx = pl.program_id(1)

    @pl.when(h_idx == 0)
    def _init():
        acc_ref[...] = jnp.zeros_like(acc_ref)

    # fn(x) on this hidden slice: GELU(x @ W1[:, h] + b1[h]) @ W2[h, :]
    h = jnp.dot(x_ref[...], w1_ref[...], preferred_element_type=jnp.float32)
    h = h + b1_ref[...].astype(jnp.float32)
    h = jax.nn.gelu(h, approximate=True)  # tanh form -> EUP slot (free when MXU-bound)

    acc_ref[...] += jnp.dot(
        h.astype(w2_ref.dtype), w2_ref[...], preferred_element_type=jnp.float32
    )

    @pl.when(h_idx == pl.num_programs(1) - 1)
    def _finalize():
        # Residual.forward: fn(x) + x   (plus the second linear's bias)
        out = acc_ref[...] + b2_ref[...].astype(jnp.float32) + x_ref[...].astype(jnp.float32)
        o_ref[...] = out.astype(o_ref.dtype)


def residual_feedforward(x, w1, b1, w2, b2, *, tm=256, th=512):
    """x: (B, S, D). Returns fn(x) + x with fn = Linear -> GELU -> Linear.

    tm: row tile (multiple of 8).  th: hidden tile (multiple of 128).
    Pass bf16 x/weights for bf16 MXU throughput; accumulation stays f32.
    """
    assert tm % 8 == 0, "row tile must be a multiple of 8"
    assert th % 128 == 0, "hidden tile must be a multiple of 128"

    B, S, D = x.shape
    H = w1.shape[1]
    M = B * S

    # --- lane-dense / tile-aligned padding (exact: zeros contribute nothing) ---
    Dp = _round_up(D, 128)
    tm_eff = min(tm, _round_up(M, 8))
    Mp = _round_up(M, tm_eff)

    Hp128 = _round_up(H, 128)
    if Hp128 <= th:
        th_eff, Hp = Hp128, Hp128
    else:
        th_eff, Hp = th, _round_up(H, th)

    x2d = jnp.pad(x.reshape(M, D), ((0, Mp - M), (0, Dp - D)))
    w1p = jnp.pad(w1, ((0, Dp - D), (0, Hp - H)))
    b1p = jnp.pad(b1.reshape(1, H), ((0, 0), (0, Hp - H)))
    w2p = jnp.pad(w2, ((0, Hp - H), (0, Dp - D)))
    b2p = jnp.pad(b2.reshape(1, D), ((0, 0), (0, Dp - D)))

    grid = (Mp // tm_eff, Hp // th_eff)

    # --- explicit VMEM budget: double-buffered tiles + accumulator + headroom ---
    isx = x.dtype.itemsize
    isw = w1.dtype.itemsize
    vmem_needed = (
        tm_eff * Dp * 4                     # f32 accumulator scratch
        + 2 * tm_eff * Dp * isx             # x tile (double buffered)
        + 2 * tm_eff * Dp * isx             # out tile
        + 2 * Dp * th_eff * isw             # W1 tile
        + 2 * th_eff * Dp * isw             # W2 tile
        + 2 * (th_eff + Dp) * isw           # biases
    )
    vmem_limit = int(min(max(vmem_needed + (8 << 20), 32 << 20), 56 << 20))

    out2d = pl.pallas_call(
        residual_ff_kernel,
        out_shape=jax.ShapeDtypeStruct((Mp, Dp), x.dtype),
        grid_spec=pltpu.PrefetchScalarGridSpec(
            num_scalar_prefetch=0,
            grid=grid,
            in_specs=[
                pl.BlockSpec((tm_eff, Dp), lambda i, h: (i, 0)),   # x rows
                pl.BlockSpec((Dp, th_eff), lambda i, h: (0, h)),   # W1 hidden slice
                pl.BlockSpec((1, th_eff), lambda i, h: (0, h)),    # b1 hidden slice
                pl.BlockSpec((th_eff, Dp), lambda i, h: (h, 0)),   # W2 hidden slice
                pl.BlockSpec((1, Dp), lambda i, h: (0, 0)),        # b2
            ],
            out_specs=pl.BlockSpec((tm_eff, Dp), lambda i, h: (i, 0)),
            scratch_shapes=[pltpu.VMEM((tm_eff, Dp), jnp.float32)],
        ),
        compiler_params=pltpu.CompilerParams(
            dimension_semantics=("parallel", "arbitrary"),
            vmem_limit_bytes=vmem_limit,
        ),
    )(x2d, w1p, b1p, w2p, b2p)

    return out2d[:M, :D].reshape(B, S, D)


def reference(x, w1, b1, w2, b2):
    h = jax.nn.gelu(jnp.einsum("bsd,dh->bsh", x, w1) + b1, approximate=True)
    y = jnp.einsum("bsh,hd->bsd", h, w2) + b2
    return y + x


if __name__ == "__main__":
    # Deliberately unaligned small shapes to exercise the padding path.
    B, S, D, H = 2, 24, 96, 208

    key = jax.random.PRNGKey(0)
    kx, k1, k2, k3, k4 = jax.random.split(key, 5)
    x = jax.random.normal(kx, (B, S, D), dtype=jnp.float32)
    w1 = jax.random.normal(k1, (D, H), dtype=jnp.float32) * 0.05
    b1 = jax.random.normal(k2, (H,), dtype=jnp.float32) * 0.05
    w2 = jax.random.normal(k3, (H, D), dtype=jnp.float32) * 0.05
    b2 = jax.random.normal(k4, (D,), dtype=jnp.float32) * 0.05

    # Small tiles so the tiny test still runs a 2x2 grid (exercises the
    # accumulator init/finalize and row parallelism). Production defaults are
    # tm=256, th=512.
    out = residual_feedforward(x, w1, b1, w2, b2, tm=32, th=128)
    out = jax.block_until_ready(out)

    ref = reference(x, w1, b1, w2, b2)
    assert out.shape == x.shape and out.dtype == x.dtype
    assert jnp.allclose(out, ref, atol=1e-4, rtol=1e-4)

    print("KERNEL_OK")
</pallas_src>

<mosaic_0001>
module attributes {stable_mosaic.version = 11 : i64} {
  func.func @residual_ff_kernel(%arg0: i32, %arg1: i32, %arg2: memref<32x128xf32, #tpu.memory_space<vmem>>, %arg3: memref<128x128xf32, #tpu.memory_space<vmem>>, %arg4: memref<1x128xf32, #tpu.memory_space<vmem>>, %arg5: memref<128x128xf32, #tpu.memory_space<vmem>>, %arg6: memref<1x128xf32, #tpu.memory_space<vmem>>, %arg7: memref<32x128xf32, #tpu.memory_space<vmem>>, %arg8: memref<32x128xf32, #tpu.memory_space<vmem>>) attributes {dimension_semantics = [#tpu.dimension_semantics<parallel>, #tpu.dimension_semantics<arbitrary>], iteration_bounds = array<i64: 2, 2>, scalar_prefetch = 0 : i64, scratch_operands = 1 : i64, tpu.core_type = #tpu.core_type<tc>, window_params = [{transform_indices = @transform_0, window_bounds = array<i64: 32, 128>}, {transform_indices = @transform_1, window_bounds = array<i64: 128, 128>}, {transform_indices = @transform_2, window_bounds = array<i64: 1, 128>}, {transform_indices = @transform_3, window_bounds = array<i64: 128, 128>}, {pipeline_mode = #tpu.pipeline_mode<synchronous>, transform_indices = @transform_4, window_bounds = array<i64: 1, 128>}, {transform_indices = @transform_5, window_bounds = array<i64: 32, 128>}]} {
    %c0_i32 = arith.constant 0 : i32
    %0 = arith.cmpi eq, %arg1, %c0_i32 : i32
    %1 = arith.extui %0 : i1 to i32
    %c0_i32_0 = arith.constant 0 : i32
    %2 = arith.cmpi ne, %1, %c0_i32_0 : i32
    scf.if %2 {
      %cst_18 = arith.constant 0.000000e+00 : f32
      %30 = vector.broadcast %cst_18 : f32 to vector<32x128xf32>
      %c0_19 = arith.constant 0 : index
      %c0_20 = arith.constant 0 : index
      %31 = vector.load %arg8[%c0_19, %c0_20] : memref<32x128xf32, #tpu.memory_space<vmem>>, vector<32x128xf32>
      tpu.vector_store %arg8[%c0_19, %c0_20], %30 {strides = array<i32>} : memref<32x128xf32, #tpu.memory_space<vmem>>, vector<32x128xf32>,
    } else {
    }
    %c0 = arith.constant 0 : index
    %c0_1 = arith.constant 0 : index
    %3 = vector.load %arg2[%c0, %c0_1] : memref<32x128xf32, #tpu.memory_space<vmem>>, vector<32x128xf32>
    %c0_2 = arith.constant 0 : index
    %c0_3 = arith.constant 0 : index
    %4 = vector.load %arg3[%c0_2, %c0_3] : memref<128x128xf32, #tpu.memory_space<vmem>>, vector<128x128xf32>
    %cst = arith.constant dense<0.000000e+00> : vector<32x128xf32>
    %5 = tpu.matmul %3, %4, %cst {dimension_numbers = #tpu.dot_dimension_numbers<[1], [0], [0], [1], [0, 0, 1, 1], [], []>} : vector<32x128xf32>, vector<128x128xf32>, vector<32x128xf32> -> vector<32x128xf32>
    %c0_4 = arith.constant 0 : index
    %c0_5 = arith.constant 0 : index
    %6 = vector.load %arg4[%c0_4, %c0_5] : memref<1x128xf32, #tpu.memory_space<vmem>>, vector<1x128xf32>
    %7 = vector.broadcast %6 : vector<1x128xf32> to vector<32x128xf32>
    %8 = arith.addf %5, %7 : vector<32x128xf32>
    %9 = arith.mulf %8, %8 : vector<32x128xf32>
    %10 = arith.mulf %8, %9 : vector<32x128xf32>
    %cst_6 = arith.constant 4.471500e-02 : f32
    %11 = vector.broadcast %cst_6 : f32 to vector<32x128xf32>
    %12 = arith.mulf %11, %10 : vector<32x128xf32>
    %13 = arith.addf %8, %12 : vector<32x128xf32>
    %cst_7 = arith.constant 0.797884583 : f32
    %14 = vector.broadcast %cst_7 : f32 to vector<32x128xf32>
    %15 = arith.mulf %14, %13 : vector<32x128xf32>
    %16 = math.tanh %15 : vector<32x128xf32>
    %cst_8 = arith.constant 1.000000e+00 : f32
    %17 = vector.broadcast %cst_8 : f32 to vector<32x128xf32>
    %18 = arith.addf %17, %16 : vector<32x128xf32>
    %cst_9 = arith.constant 5.000000e-01 : f32
    %19 = vector.broadcast %cst_9 : f32 to vector<32x128xf32>
    %20 = arith.mulf %19, %18 : vector<32x128xf32>
    %21 = arith.mulf %8, %20 : vector<32x128xf32>
    %c0_10 = arith.constant 0 : index
    %c0_11 = arith.constant 0 : index
    %22 = vector.load %arg8[%c0_10, %c0_11] : memref<32x128xf32, #tpu.memory_space<vmem>>, vector<32x128xf32>
    %c0_12 = arith.constant 0 : index
    %c0_13 = arith.constant 0 : index
    %23 = vector.load %arg5[%c0_12, %c0_13] : memref<128x128xf32, #tpu.memory_space<vmem>>, vector<128x128xf32>
    %cst_14 = arith.constant dense<0.000000e+00> : vector<32x128xf32>
    %24 = tpu.matmul %21, %23, %cst_14 {dimension_numbers = #tpu.dot_dimension_numbers<[1], [0], [0], [1], [0, 0, 1, 1], [], []>} : vector<32x128xf32>, vector<128x128xf32>, vector<32x128xf32> -> vector<32x128xf32>
    %25 = arith.addf %22, %24 : vector<32x128xf32>
    %c0_15 = arith.constant 0 : index
    %c0_16 = arith.constant 0 : index
    %26 = vector.load %arg8[%c0_15, %c0_16] : memref<32x128xf32, #tpu.memory_space<vmem>>, vector<32x128xf32>
    tpu.vector_store %arg8[%c0_15, %c0_16], %25 {strides = array<i32>} : memref<32x128xf32, #tpu.memory_space<vmem>>, vector<32x128xf32>,
    %c1_i32 = arith.constant 1 : i32
    %27 = arith.cmpi eq, %arg1, %c1_i32 : i32
    %28 = arith.extui %27 : i1 to i32
    %c0_i32_17 = arith.constant 0 : i32
    %29 = arith.cmpi ne, %28, %c0_i32_17 : i32
    scf.if %29 {
      %c0_18 = arith.constant 0 : index
      %c0_19 = arith.constant 0 : index
      %30 = vector.load %arg8[%c0_18, %c0_19] : memref<32x128xf32, #tpu.memory_space<vmem>>, vector<32x128xf32>
      %c0_20 = arith.constant 0 : index
      %c0_21 = arith.constant 0 : index
      %31 = vector.load %arg6[%c0_20, %c0_21] : memref<1x128xf32, #tpu.memory_space<vmem>>, vector<1x128xf32>
      %32 = vector.broadcast %31 : vector<1x128xf32> to vector<32x128xf32>
      %33 = arith.addf %30, %32 : vector<32x128xf32>
      %c0_22 = arith.constant 0 : index
      %c0_23 = arith.constant 0 : index
      %34 = vector.load %arg2[%c0_22, %c0_23] : memref<32x128xf32, #tpu.memory_space<vmem>>, vector<32x128xf32>
      %35 = arith.addf %33, %34 : vector<32x128xf32>
      %c0_24 = arith.constant 0 : index
      %c0_25 = arith.constant 0 : index
      %36 = vector.load %arg7[%c0_24, %c0_25] : memref<32x128xf32, #tpu.memory_space<vmem>>, vector<32x128xf32>
      tpu.vector_store %arg7[%c0_24, %c0_25], %35 {strides = array<i32>} : memref<32x128xf32, #tpu.memory_space<vmem>>, vector<32x128xf32>,
    } else {
    }
    return
  }
  func.func @transform_0(%arg0: i32, %arg1: i32) -> (i32, i32) {
    %c0_i32 = arith.constant 0 : i32
    %c0_i32_0 = arith.constant 0 : i32
    return %arg0, %c0_i32 : i32, i32
  }
  func.func @transform_1(%arg0: i32, %arg1: i32) -> (i32, i32) {
    %c0_i32 = arith.constant 0 : i32
    %c0_i32_0 = arith.constant 0 : i32
    return %c0_i32, %arg1 : i32, i32
  }
  func.func @transform_2(%arg0: i32, %arg1: i32) -> (i32, i32) {
    %c0_i32 = arith.constant 0 : i32
    %c0_i32_0 = arith.constant 0 : i32
    return %c0_i32, %arg1 : i32, i32
  }
  func.func @transform_3(%arg0: i32, %arg1: i32) -> (i32, i32) {
    %c0_i32 = arith.constant 0 : i32
    %c0_i32_0 = arith.constant 0 : i32
    return %arg1, %c0_i32 : i32, i32
  }
  func.func @transform_4(%arg0: i32, %arg1: i32) -> (i32, i32) {
    %c0_i32 = arith.constant 0 : i32
    %c0_i32_0 = arith.constant 0 : i32
    %c0_i32_1 = arith.constant 0 : i32
    return %c0_i32, %c0_i32_0 : i32, i32
  }
  func.func @transform_5(%arg0: i32, %arg1: i32) -> (i32, i32) {
    %c0_i32 = arith.constant 0 : i32
    %c0_i32_0 = arith.constant 0 : i32
    return %arg0, %c0_i32 : i32, i32
  }
}

</mosaic_0001>

<bundles_post_ra>
// kernel: tpu_custom_call.1
= control target key start
LH: loop header
LB: loop body
LE: loop exit
PB: predicated region body
PF: predicated region fallthrough
CT: control target
= control target key end

     0   :  { %s1530_s0 = inlined_call_operand.hbm [shape: f32[64,128], index: 0, kind: input, shape index: {}]   ;;  %s1531_s1 = inlined_call_operand.hbm [shape: f32[128,256], index: 1, kind: input, shape index: {}]   ;;  %s1532_s2 = inlined_call_operand.hbm [shape: f32[1,256], index: 2, kind: input, shape index: {}]   ;;  %s1533_s3 = inlined_call_operand.hbm [shape: f32[256,128], index: 3, kind: input, shape index: {}]   ;;  %s1534_s4 = inlined_call_operand.vmem [shape: f32[1,128], index: 4, kind: input, shape index: {}]   ;;  %s1535_s5 = inlined_call_operand.hbm [shape: f32[64,128], index: 5, kind: output, shape index: {}]  }
   0x1   :  { %1552 = sst [smem:[#allocation27_spill]] %s1530_s0 }
   0x2   :  { %1553 = sst [smem:[#allocation28_spill]] %s1531_s1 }
   0x3   :  { %1554 = sst [smem:[#allocation29_spill]] %s1532_s2 }
   0x4   :  { %1555 = sst [smem:[#allocation30_spill]] %s1535_s5 }
   0x5   :  { %10 = vsyncpa [#allocation4], 0 }
   0x6   :  { %12 = vsyncpa [#allocation4 + $0x1], 0 }
   0x7   :  { %13 = vsyncpa [#allocation7], 0 }
   0x8   :  { %15 = vsyncpa [#allocation7 + $0x1], 0 }
   0x9   :  { %16 = vsyncpa [#allocation10], 0 }
   0xa   :  { %18 = vsyncpa [#allocation10 + $0x1], 0 }
   0xb   :  { %19 = vsyncpa [#allocation5], 0 }
   0xc   :  { %21 = vsyncpa [#allocation5 + $0x1], 0  ;;  %s1199_s18 = smov 0   ;;  %s1201_s19 = smov 0  }
   0xd   :  { %s1203_s20 = smov 0   ;;  %s1205_s21 = smov 0  }
   0xe   :  { %s1207_s22 = smov 0   ;;  %s1209_s23 = smov 0  }
   0xf   :  { %s1211_s24 = smov 0   ;;  %s1213_s25 = smov 0  }
  0x10   :  { %s1215_s26 = smov 0   ;;  %s1217_s27 = smov 0  }
  0x11   :  { %s1219_s28 = smov 0  }
  0x12 LB: > { %1556 = sst [smem:[#allocation16_spill]] %s1129_s20  ;;  %p54_p0 = scmp.eq.s32.totalorder %s1161_s28, 0  ;;  %s1161_s28 = sphi %s1219_s28, %s27_s28   ;;  %s1157_s27 = sphi %s1217_s27, %s1593_s27   ;;  %s1153_s26 = sphi %s1215_s26, %s1600_s26   ;;  %s1149_s25 = sphi %s1213_s25, %s1599_s25   ;;  %s1145_s24 = sphi %s1211_s24, %s1598_s24   ;;  %s1141_s23 = sphi %s1209_s23, %s1590_s23   ;;  %s1137_s22 = sphi %s1207_s22, %s1597_s22   ;;  %s1133_s21 = sphi %s1205_s21, %s1596_s21   ;;  %s1129_s20 = sphi %s1203_s20, %s1588_s20   ;;  %s1125_s19 = sphi %s1201_s19, %s1595_s19   ;;  %s1121_s18 = sphi %s1199_s18, %s1594_s18  }
  0x13   : > { %1557 = sst [smem:[#allocation17_spill]] %s1133_s21  ;;  %p79_p1 = scmp.ne.s32.totalorder %s1129_s20, %s1125_s19 }
  0x14   : > { %1558 = sst [smem:[#allocation18_spill]] %s1141_s23  ;;  %p85_p2 = scmp.ne.s32.totalorder %s1125_s19, %s1121_s18 }
  0x15   : > { %1559 = sst [smem:[#allocation19_spill]] %s1149_s25  ;;  %p1542_p3 = scmp.lt.s32.totalorder %s1161_s28, 4 }
  0x16   : > { %1560 = sst [smem:[#allocation20_spill]] %s1157_s27  ;;  %p81_p4 = por %p79_p1, %p54_p0 }
  0x17   : > { %1561 = sst [smem:[#allocation21_spill]] %s1161_s28  ;;  %s233_s30 = sand.u32 1, %s1161_s28  }
  0x18   : > { %s1265_s6 = sand.u32 1, %s1129_s20   ;;  %s727_s8 = sshll.u32 %s1153_s26, 3 }
  0x19   : > { %s1536_s7 = sshll.u32 %s1265_s6, 7  ;;  %s1562_s1 = sld [smem:[#allocation28_spill]] }
  0x1a   : > { %s237_s13 = scalar_lea.vmem [#allocation6], %s1536_s7  ;;  %p1276_p5 = pnand %p1542_p3, %p81_p4 }
  0x1b   : > { %s244_s14 = sshll.u32 %s237_s13, 4  ;;  %p731_p6 = scmp.ge.s32.totalorder %s1161_s28, 1  ;;  %s245_s14 = int_to_ptr.vmem [resolvable:$true] %s244_s14 }
  0x1c   : > { %p291_p7 = scmp.lt.s32.totalorder %s1161_s28, 5  ;;  %s1282_s16 = scalar_lea.sflag [#allocation7], %s233_s30 }
  0x1d   : > { %s1163_s17 = smov 256   ;;  %s1539_s9 = smov 8  }
  0x1e   : > { %p1289_p8 = pnand %p731_p6, %p291_p7  ;;  %s1294_s30 = sadd.s32 4294967295, %s1161_s28  }
  0x1f   : > { %s241_s11 = scalar_lea.hbm %s1562_s1, %s727_s8  ;;  %s1537_s8 = smov 128  }
  0x20   : > { %s242_s12 = sshll.u32 %s241_s11, 4  ;;  %s720_s11 = sadd.s32 4294967294, %s1161_s28   ;;  %s243_s12 = int_to_ptr.hbm [resolvable:$true] %s242_s12 }
  0x21   : > { %794 = dma.hbm_to_vmem [thread:$0]  (!%p1276_p5), %s243_s12, 2048, %s245_s14, %s1282_s16, %s1163_s17, %s1537_s8, %s1539_s9  }
  0x22   : > { %s36_s13 = sadd.s32 1, %s1153_s26  ;;  %s39_s7 = sadd.s32 1, %s1157_s27 }
  0x23   : > { %p37_p9 = scmp.ge.s32.totalorder %s36_s13, 2  ;;  %s46_s29 = sadd.s32 1, %s1141_s23 }
  0x24   : > { %p53_p10 = scmp.ne.s32.totalorder %s1141_s23, %s1137_s22  ;;  %p59_p11 = scmp.ne.s32.totalorder %s1137_s22, %s1133_s21 }
  0x25   : > { %s1602_s13 = smov (%p37_p9, %s36_s13), 0  ;;  %s1604_s7 = smov (!%p37_p9, %s39_s7), %s1157_s27 }
  0x26   : > { %1565 = sst [smem:[#allocation22_spill]] %s1602_s13  ;;  %p1312_p12 = por %p54_p0, %p53_p10 }
  0x27   : > { %p60_p13 = scmp.eq.s32.totalorder %s1294_s30, 0  ;;  %p41_p1 = scmp.ge.s32.totalorder %s1604_s7, 2 }
  0x28   : > { %s69_s14 = ssub.s32 %s1153_s26, %s1602_s13  ;;  %s1569_s8 = sadd.s32 1, %s1129_s20 }
  0x29   : > { %p1322_p4 = por %p60_p13, %p59_p11  ;;  %p70_p6 = scmp.eq.s32.totalorder %s69_s14, 0 }
  0x2a   : > { %s1606_s7 = smov (%p41_p1, %s1604_s7), 0  ;;  %p1338_p0 = por %p85_p2, %p60_p13 }
  0x2b   : > { %1568 = sst [smem:[#allocation23_spill]] %s1606_s7  ;;  %s43_s1 = ssub.s32 %s1157_s27, %s1606_s7 }
  0x2c   : > { %s1331_s9 = scalar_select %p70_p6, %s1129_s20, %s1569_s8  }
  0x2d   : > { %p44_p7 = scmp.eq.s32.totalorder %s43_s1, 0  ;;  %p182_p9 = scmp.eq.s32.totalorder %s1294_s30, 3 }
  0x2e   : > { %1570 = sst [smem:[#allocation24_spill]] %s1331_s9  ;;  %p188_p3 = scmp.eq.s32.totalorder %s720_s11, 3 }
  0x2f   : > { %s211_s13 = sand.u32 1, %s1141_s23   ;;  %p1350_p1 = por %p182_p9, %p53_p10 }
  0x30   : > { %s1345_s14 = scalar_select %p44_p7, %s1141_s23, %s46_s29  }
  0x31   : > { %p1357_p2 = por %p188_p3, %p59_p11  ;;  %s723_s8 = sshll.u32 %s211_s13, 5 }
  0x32   : > { %1572 = sst [smem:[#allocation25_spill]] %s1345_s14  ;;  %s743_s7 = sshll.u32 %s1157_s27, 5 }
  0x33   : > { %s1574_s18 = scalar_select %p1357_p2, 1, 0 }
  0x34   : > { %s1576_s0 = sld [smem:[#allocation27_spill]]  ;;  %s215_s11 = scalar_lea.vmem [#allocation3], %s723_s8 }
  0x35   : > { %1575 = sst [smem:[#allocation26_spill]] %s1574_s18  ;;  %s223_s14 = sshll.u32 %s215_s11, 4  ;;  %s224_s14 = int_to_ptr.vmem [resolvable:$true] %s223_s14 }
  0x36   : > { %p1577_p3 = scmp.lt.s32.totalorder %s1161_s28, 4  ;;  %s1578_s2 = sld [smem:[#allocation29_spill]] }
  0x37   : > { %s212_s9 = scalar_lea.sflag [#allocation4], %s211_s13  ;;  %s1579_s1 = smov 8  }
  0x38   : > { %p789_p10 = pnand %p1577_p3, %p1312_p12  ;;  %s257_s8 = scalar_lea.vmem [#allocation8], %s1265_s6 }
  0x39   : > { %s744_s12 = sshll.u32 %s1153_s26, 7  ;;  %s1581_s18 = sshll.u32 %s1265_s6, 7 }
  0x3a   : > { %s220_s29 = scalar_lea.hbm %s1576_s0, %s743_s7  ;;  %s1580_s7 = smov 128  }
  0x3b   : > { %s221_s23 = sshll.u32 %s220_s29, 4  ;;  %s264_s29 = sshll.u32 %s257_s8, 4  ;;  %s222_s23 = int_to_ptr.hbm [resolvable:$true] %s221_s23  ;;  %s265_s29 = int_to_ptr.vmem [resolvable:$true] %s264_s29 }
  0x3c   : > { %s260_s27 = scalar_lea.hbm %s1578_s2, %s1153_s26  ;;  %s280_s20 = scalar_lea.hbm %s1533_s3, %s744_s12 }
  0x3d   : > { %s262_s21 = sshll.u32 %s260_s27, 4  ;;  %s275_s2 = scalar_lea.vmem [#allocation9], %s1581_s18  ;;  %s263_s21 = int_to_ptr.hbm [resolvable:$true] %s262_s21 }
  0x3e   : > { %791 = dma.hbm_to_vmem [thread:$0]  (!%p789_p10), %s222_s23, 512, %s224_s14, %s212_s9, %s1580_s7, %s1580_s7, %s1579_s1  }
  0x3f   : > { %797 = dma.hbm_to_vmem [thread:$0]  (!%p1276_p5), %s263_s21, 16, %s265_s29, %s1282_s16  }
  0x40   : > { %s283_s27 = sshll.u32 %s275_s2, 4  ;;  %s281_s28 = sshll.u32 %s280_s20, 4  ;;  %s284_s27 = int_to_ptr.vmem [resolvable:$true] %s283_s27  ;;  %s282_s28 = int_to_ptr.hbm [resolvable:$true] %s281_s28 }
  0x41   : > { %s272_s13 = scalar_lea.sflag [#allocation10], %s1265_s6  ;;  %295 = sbr.rel (%p1289_p8) target bundleno = 456 (0x1c8), region = 40 }
  0x42   : > { %800 = dma.hbm_to_vmem [thread:$0]  (!%p1276_p5), %s282_s28, 2048, %s284_s27, %s272_s13, %s1580_s7, %s1580_s7, %s1579_s1  }
  0x43   : > { %s1395_s21 = sand.u32 (!%p1289_p8), 1, %s1137_s22  }
  0x44   : > { %s732_s0 = sshll.u32 (!%p1289_p8), %s1395_s21, 5  ;;  %s298_s2 = scalar_lea.sflag (!%p1289_p8), [#allocation4], %s1395_s21 }
  0x45   : > { %s1399_s23 = scalar_lea.vmem (!%p1289_p8), [#allocation3], %s732_s0 }
  0x46   : > { %1104 = dma.done.wait (%p1322_p4), %s298_s2, 512  }
  0x47   : > { %1106 = vsyncadd (%p1322_p4), %s298_s2, 4294966784  ;;  %s307_s28 = sand.u32 1, %s1294_s30   ;;  %s1407_s6 = sand.u32 1, %s1125_s19  }
  0x48   : > { %s733_s15 = sshll.u32 %s1407_s6, 7  ;;  %s308_s16 = scalar_lea.sflag [#allocation7], %s307_s28 }
  0x49   : > { %s1410_s10 = scalar_lea.vmem [#allocation6], %s733_s15 }
  0x4a   : > { %1108 = dma.done.wait (%p1338_p0), %s308_s16, 2064  }
  0x4b   : > { %1110 = vsyncadd (%p1338_p0), %s308_s16, 4294965232  ;;  %s320_s17 = scalar_lea.vmem [#allocation8], %s1407_s6  ;;  %s327_s14 = scalar_lea.sflag [#allocation10], %s1407_s6 }
  0x4c   : > { %s1418_s9 = scalar_lea.vmem [#allocation9], %s733_s15 }
  0x4d   : > { %1112 = dma.done.wait (%p1338_p0), %s327_s14, 2048  }
  0x4e   : > { %1114 = vsyncadd (%p1338_p0), %s327_s14, 4294965248  ;;  %s1424_s30 = scalar_lea.vmem [#allocation11], %s732_s0  ;;  %p736_p5 = scmp.ne.s32.totalorder %s1145_s24, 0 }
  0x50   : > { %378 = sbr.rel (%p736_p5) target bundleno = 90 (0x5a), region = 60 }
  0x55   : > { %v1166_v0 = vmov 0.0  }
  0x56   : > { %379 = vst [vmem:[#allocation2 + $0x10] sm:$0xff] %v1166_v0 }
  0x57   : > { %380 = vst [vmem:[#allocation2] sm:$0xff] %v1166_v0 }
  0x58   : > { %381 = vst [vmem:[#allocation2 + $0x18] sm:$0xff] %v1166_v0 }
  0x59   : > { %382 = vst [vmem:[#allocation2 + $0x8] sm:$0xff] %v1166_v0 }
  0x5a PF: > { %v402_v1 = vld [vmem:[%s1410_s10 + $0x78] sm:$0xff]  ;;  %v401_v2 = vld [vmem:[%s1410_s10 + $0x70] sm:$0xff]  ;;  %v400_v3 = vld [vmem:[%s1410_s10 + $0x68] sm:$0xff]  ;;  %p737_p8 = scmp.ne.s32.totalorder %s1145_s24, 1 }
  0x5b   : > { %407 = vmatpush.msra.mxu0 %v402_v1  ;;  %746 = vmatpush.msra.mxu2 %v402_v1  ;;  %v399_v4 = vld [vmem:[%s1410_s10 + $0x60] sm:$0xff]  ;;  %v398_v5 = vld [vmem:[%s1410_s10 + $0x58] sm:$0xff]  ;;  %v397_v6 = vld [vmem:[%s1410_s10 + $0x50] sm:$0xff] }
  0x5c   : > { %v491_v7 = vld [vmem:[%s1418_s9 + $0x78] sm:$0xff]  ;;  %v490_v8 = vld [vmem:[%s1418_s9 + $0x70] sm:$0xff]  ;;  %v396_v9 = vld [vmem:[%s1410_s10 + $0x48] sm:$0xff] }
  0x5d   : > { %408 = vmatpush.msra.mxu0 %v401_v2  ;;  %747 = vmatpush.msra.mxu2 %v401_v2  ;;  %v489_v10 = vld [vmem:[%s1418_s9 + $0x68] sm:$0xff]  ;;  %v395_v11 = vld [vmem:[%s1410_s10 + $0x40] sm:$0xff]  ;;  %v394_v12 = vld [vmem:[%s1410_s10 + $0x38] sm:$0xff] }
  0x5e   : > { %492 = vmatpush.msra.mxu1 %v491_v7  ;;  %762 = vmatpush.msra.mxu3 %v491_v7  ;;  %v393_v13 = vld [vmem:[%s1410_s10 + $0x30] sm:$0xff]  ;;  %v392_v14 = vld [vmem:[%s1410_s10 + $0x28] sm:$0xff]  ;;  %v391_v15 = vld [vmem:[%s1410_s10 + $0x20] sm:$0xff] }
  0x5f   : > { %409 = vmatpush.msra.mxu0 %v400_v3  ;;  %748 = vmatpush.msra.mxu2 %v400_v3  ;;  %v390_v16 = vld [vmem:[%s1410_s10 + $0x18] sm:$0xff]  ;;  %v389_v17 = vld [vmem:[%s1410_s10 + $0x10] sm:$0xff]  ;;  %v388_v18 = vld [vmem:[%s1410_s10 + $0x8] sm:$0xff] }
  0x60   : > { %493 = vmatpush.msra.mxu1 %v490_v8  ;;  %763 = vmatpush.msra.mxu3 %v490_v8  ;;  %v387_v19 = vld [vmem:[%s1410_s10] sm:$0xff]  ;;  %v385_v21 = vld [vmem:[%s1399_s23 + $0x10] sm:$0xff]  ;;  %v384_v22 = vld [vmem:[%s1399_s23 + $0x8] sm:$0xff] }
  0x61   : > { %410 = vmatpush.msra.mxu0 %v399_v4  ;;  %749 = vmatpush.msra.mxu2 %v399_v4  ;;  %v383_v20 = vld [vmem:[%s1399_s23] sm:$0xff]  ;;  %v386_v23 = vld [vmem:[%s1399_s23 + $0x18] sm:$0xff]  ;;  %v485_v27 = vld [vmem:[%s1418_s9 + $0x48] sm:$0xff] }
  0x62   : > { %494 = vmatpush.msra.mxu1 %v489_v10  ;;  %764 = vmatpush.msra.mxu3 %v489_v10  ;;  %v488_v24 = vld [vmem:[%s1418_s9 + $0x60] sm:$0xff]  ;;  %v487_v25 = vld [vmem:[%s1418_s9 + $0x58] sm:$0xff]  ;;  %v486_v26 = vld [vmem:[%s1418_s9 + $0x50] sm:$0xff] }
  0x63   : > { %411 = vmatpush.msra.mxu0 %v398_v5  ;;  %750 = vmatpush.msra.mxu2 %v398_v5  ;;  %v484_v28 = vld [vmem:[%s1418_s9 + $0x40] sm:$0xff]  ;;  %v483_v29 = vld [vmem:[%s1418_s9 + $0x38] sm:$0xff]  ;;  %v482_v30 = vld [vmem:[%s1418_s9 + $0x30] sm:$0xff] }
  0x64   : > { %495 = vmatpush.msra.mxu1 %v488_v24  ;;  %765 = vmatpush.msra.mxu3 %v488_v24  ;;  %v481_v31 = vld [vmem:[%s1418_s9 + $0x28] sm:$0xff]  ;;  %v480_v32 = vld [vmem:[%s1418_s9 + $0x20] sm:$0xff]  ;;  %v479_v33 = vld [vmem:[%s1418_s9 + $0x18] sm:$0xff] }
  0x65   : > { %412 = vmatpush.msra.mxu0 %v397_v6  ;;  %751 = vmatpush.msra.mxu2 %v397_v6  ;;  %v478_v34 = vld [vmem:[%s1418_s9 + $0x10] sm:$0xff]  ;;  %v477_v35 = vld [vmem:[%s1418_s9 + $0x8] sm:$0xff]  ;;  %v476_v36 = vld [vmem:[%s1418_s9] sm:$0xff] }
  0x66   : > { %496 = vmatpush.msra.mxu1 %v487_v25  ;;  %766 = vmatpush.msra.mxu3 %v487_v25  ;;  %v901_v37 = vld [vmem:[%s320_s17] ss:$0 sm:$0xff]  ;;  %v474_v24 = vld [vmem:[#allocation2 + $0x18] sm:$0xff] }
  0x67   : > { %413 = vmatpush.msra.mxu0 %v396_v9  ;;  %752 = vmatpush.msra.mxu2 %v396_v9 }
  0x68   : > { %497 = vmatpush.msra.mxu1 %v486_v26  ;;  %767 = vmatpush.msra.mxu3 %v486_v26 }
  0x69   : > { %414 = vmatpush.msra.mxu0 %v395_v11  ;;  %753 = vmatpush.msra.mxu2 %v395_v11 }
  0x6a   : > { %498 = vmatpush.msra.mxu1 %v485_v27  ;;  %768 = vmatpush.msra.mxu3 %v485_v27  ;;  %v475_v27 = vld [vmem:[#allocation2 + $0x8] sm:$0xff] }
  0x6b   : > { %415 = vmatpush.msra.mxu0 %v394_v12  ;;  %754 = vmatpush.msra.mxu2 %v394_v12 }
  0x6c   : > { %499 = vmatpush.msra.mxu1 %v484_v28  ;;  %769 = vmatpush.msra.mxu3 %v484_v28 }
  0x6d   : > { %416 = vmatpush.msra.mxu0 %v393_v13  ;;  %755 = vmatpush.msra.mxu2 %v393_v13 }
  0x6e   : > { %500 = vmatpush.msra.mxu1 %v483_v29  ;;  %770 = vmatpush.msra.mxu3 %v483_v29 }
  0x6f   : > { %417 = vmatpush.msra.mxu0 %v392_v14  ;;  %756 = vmatpush.msra.mxu2 %v392_v14 }
  0x70   : > { %501 = vmatpush.msra.mxu1 %v482_v30  ;;  %771 = vmatpush.msra.mxu3 %v482_v30 }
  0x71   : > { %418 = vmatpush.msra.mxu0 %v391_v15  ;;  %757 = vmatpush.msra.mxu2 %v391_v15 }
  0x72   : > { %502 = vmatpush.msra.mxu1 %v481_v31  ;;  %772 = vmatpush.msra.mxu3 %v481_v31 }
  0x73   : > { %419 = vmatpush.msra.mxu0 %v390_v16  ;;  %758 = vmatpush.msra.mxu2 %v390_v16 }
  0x74   : > { %503 = vmatpush.msra.mxu1 %v480_v32  ;;  %773 = vmatpush.msra.mxu3 %v480_v32 }
  0x75   : > { %420 = vmatpush.msra.mxu0 %v389_v17  ;;  %759 = vmatpush.msra.mxu2 %v389_v17 }
  0x76   : > { %504 = vmatpush.msra.mxu1 %v479_v33  ;;  %774 = vmatpush.msra.mxu3 %v479_v33 }
  0x77   : > { %421 = vmatpush.msra.mxu0 %v388_v18  ;;  %760 = vmatpush.msra.mxu2 %v388_v18  ;;  %v472_v18 = vld [vmem:[#allocation2 + $0x10] sm:$0xff] }
  0x78   : > { %505 = vmatpush.msra.mxu1 %v478_v34  ;;  %775 = vmatpush.msra.mxu3 %v478_v34 }
  0x79   : > { %422 = vmatpush.msra.mxu0 %v387_v19  ;;  %761 = vmatpush.msra.mxu2 %v387_v19 }
  0x7a   : > { %423 = vmatmul.f32.vlgmr.msra.gmra.mxu0 %v383_v20  ;;  %429 = vmatmul.f32.vlgmr.msra.gmra.mxu2 %v385_v21  ;;  %v473_v21 = vld [vmem:[#allocation2] sm:$0xff] }
  0x7b   : > { %506 = vmatpush.msra.mxu1 %v477_v35  ;;  %776 = vmatpush.msra.mxu3 %v477_v35 }
  0x7d   : > { %507 = vmatpush.msra.mxu1 %v476_v36  ;;  %777 = vmatpush.msra.mxu3 %v476_v36 }
  0x82   : > { %426 = vmatmul.f32.gmra.mxu0 %v384_v22  ;;  %432 = vmatmul.f32.gmra.mxu2 %v386_v23 }
  0xf7   : > { %v424_v38 = vpop.f32.mrf.mxu0 }
  0xf8   : > { %v425_v39 = vadd.f32 %v901_v37, %v424_v38 }
  0xfa   : > { %v436_v40 = vmul.f32 %v425_v39, %v425_v39 }
  0xfc   : > { %v440_v41 = vmul.f32 %v436_v40, %v425_v39 }
  0xfd   : > { %v430_v42 = vpop.f32.mrf.mxu2 }
  0xfe   : > { %v431_v43 = vadd.f32 %v901_v37, %v430_v42  ;;  %v444_v44 = vmul.f32 0.044715, %v440_v41 }
  0xff   : > { %v427_v45 = vpop.f32.mrf.mxu0 }
 0x100   : > { %v438_v46 = vmul.f32 %v431_v43, %v431_v43  ;;  %v428_v47 = vadd.f32 %v901_v37, %v427_v45  ;;  %v448_v48 = vadd.f32 %v444_v44, %v425_v39 }
 0x102   : > { %v442_v49 = vmul.f32 %v438_v46, %v431_v43  ;;  %v437_v50 = vmul.f32 %v428_v47, %v428_v47  ;;  %v452_v51 = vmul.f32 0.7978846, %v448_v48 }
 0x104   : > { %v441_v52 = vmul.f32 %v437_v50, %v428_v47  ;;  %902 = vtanh.f32 %v452_v51  ;;  %v446_v53 = vmul.f32 0.044715, %v442_v49 }
 0x105   : > { %v433_v54 = vpop.f32.mrf.mxu2 }
 0x106   : > { %v434_v55 = vadd.f32 %v901_v37, %v433_v54  ;;  %v450_v56 = vadd.f32 %v446_v53, %v431_v43  ;;  %v445_v57 = vmul.f32 0.044715, %v441_v52 }
 0x108   : > { %v439_v58 = vmul.f32 %v434_v55, %v434_v55  ;;  %v454_v59 = vmul.f32 0.7978846, %v450_v56  ;;  %v449_v60 = vadd.f32 %v445_v57, %v428_v47 }
 0x10a   : > { %v903_v61 = vpop.eup %902  ;;  %v443_v62 = vmul.f32 %v439_v58, %v434_v55  ;;  %904 = vtanh.f32 %v454_v59  ;;  %v453_v63 = vmul.f32 0.7978846, %v449_v60 }
 0x10b   : > { %v460_v0 = vadd.f32 1.0, %v903_v61 }
 0x10c   : > { %906 = vtanh.f32 %v453_v63  ;;  %v447_v1 = vmul.f32 0.044715, %v443_v62 }
 0x10d   : > { %v464_v2 = vmul.f32 0.5, %v460_v0 }
 0x10e   : > { %v451_v3 = vadd.f32 %v447_v1, %v434_v55 }
 0x10f   : > { %v468_v4 = vmul.f32 %v464_v2, %v425_v39 }
 0x110   : > { %v905_v5 = vpop.eup %904  ;;  %v455_v6 = vmul.f32 0.7978846, %v451_v3 }
 0x111   : > { %508 = vmatmul.f32.vlgmr.msra.gmra.mxu1 %v468_v4  ;;  %v462_v7 = vadd.f32 1.0, %v905_v5 }
 0x112   : > { %v907_v8 = vpop.eup %906  ;;  %908 = vtanh.f32 %v455_v6 }
 0x113   : > { %v466_v9 = vmul.f32 0.5, %v462_v7  ;;  %v461_v10 = vadd.f32 1.0, %v907_v8 }
 0x115   : > { %v470_v11 = vmul.f32 %v466_v9, %v431_v43  ;;  %v465_v12 = vmul.f32 0.5, %v461_v10 }
 0x117   : > { %514 = vmatmul.f32.vlgmr.msra.gmra.mxu3 %v470_v11  ;;  %v469_v13 = vmul.f32 %v465_v12, %v428_v47 }
 0x118   : > { %v909_v14 = vpop.eup %908 }
 0x119   : > { %511 = vmatmul.f32.gmra.mxu1 %v469_v13  ;;  %v463_v15 = vadd.f32 1.0, %v909_v14 }
 0x11b   : > { %v467_v16 = vmul.f32 0.5, %v463_v15 }
 0x11d   : > { %v471_v17 = vmul.f32 %v467_v16, %v434_v55 }
 0x11f   : > { %517 = vmatmul.f32.gmra.mxu3 %v471_v17 }
 0x18e   : > { %v509_v19 = vpop.f32.mrf.mxu1 }
 0x18f   : > { %v521_v20 = vadd.f32 %v509_v19, %v472_v18 }
 0x191   : > { %525 = vst [vmem:[#allocation2 + $0x10] sm:$0xff] %v521_v20 }
 0x196   : > { %v512_v22 = vpop.f32.mrf.mxu1 }
 0x197   : > { %v522_v23 = vadd.f32 %v512_v22, %v473_v21 }
 0x199   : > { %526 = vst [vmem:[#allocation2] sm:$0xff] %v522_v23 }
 0x19a   : > { %v515_v25 = vpop.f32.mrf.mxu3 }
 0x19b   : > { %v523_v26 = vadd.f32 %v515_v25, %v474_v24 }
 0x19d   : > { %527 = vst [vmem:[#allocation2 + $0x18] sm:$0xff] %v523_v26 }
 0x1a1   : > { %532 = sbr.rel (%p737_p8) target bundleno = 434 (0x1b2), region = 64 }
 0x1a2   : > { %v518_v28 = vpop.f32.mrf.mxu3 }
 0x1a3   : > { %v524_v29 = vadd.f32 %v518_v28, %v475_v27 }
 0x1a5   : > { %528 = vst [vmem:[#allocation2 + $0x8] sm:$0xff] %v524_v29 }
 0x1a6   : > { %v533_v30 = vld [vmem:[#allocation2 + $0x10] sm:$0xff]  ;;  %v910_v31 = vld [vmem:[%s1534_s4] ss:$0 sm:$0xff]  ;;  %v546_v34 = vld [vmem:[%s1399_s23 + $0x8] sm:$0xff] }
 0x1a7   : > { %v545_v32 = vld [vmem:[%s1399_s23] sm:$0xff]  ;;  %v541_v35 = vadd.f32 %v910_v31, %v533_v30  ;;  %v535_v37 = vld [vmem:[#allocation2 + $0x18] sm:$0xff]  ;;  %v547_v38 = vld [vmem:[%s1399_s23 + $0x10] sm:$0xff] }
 0x1a8   : > { %v534_v33 = vld [vmem:[#allocation2] sm:$0xff]  ;;  %v543_v40 = vadd.f32 %v910_v31, %v535_v37  ;;  %v548_v42 = vld [vmem:[%s1399_s23 + $0x18] sm:$0xff] }
 0x1a9   : > { %v542_v36 = vadd.f32 %v910_v31, %v534_v33  ;;  %v549_v43 = vadd.f32 %v545_v32, %v541_v35 }
 0x1aa   : > { %v551_v45 = vadd.f32 %v547_v38, %v543_v40 }
 0x1ab   : > { %v550_v44 = vadd.f32 %v546_v34, %v542_v36  ;;  %553 = vst [vmem:[%s1424_s30] sm:$0xff] %v549_v43 }
 0x1ac   : > { %v536_v39 = vld [vmem:[#allocation2 + $0x8] sm:$0xff]  ;;  %555 = vst [vmem:[%s1424_s30 + $0x10] sm:$0xff] %v551_v45 }
 0x1ad   : > { %v544_v41 = vadd.f32 %v910_v31, %v536_v39  ;;  %554 = vst [vmem:[%s1424_s30 + $0x8] sm:$0xff] %v550_v44 }
 0x1af   : > { %v552_v46 = vadd.f32 %v548_v42, %v544_v41 }
 0x1b1   : > { %556 = vst [vmem:[%s1424_s30 + $0x18] sm:$0xff] %v552_v46 }
 0x1b2 PF: > { %s1582_s24 = sld [smem:[#allocation19_spill]]  ;;  %s570_s20 = sshll.u32 %s1424_s30, 4  ;;  %s571_s20 = int_to_ptr.vmem [resolvable:$true] %s570_s20 }
 0x1b3   : > { %s1583_s12 = sld [smem:[#allocation30_spill]]  ;;  %s558_s27 = scalar_lea.sflag [#allocation5], %s1395_s21 }
 0x1b8   : > { %s745_s7 = sshll.u32 %s1582_s24, 5 }
 0x1b9   : > { %s569_s11 = scalar_lea.hbm %s1583_s12, %s745_s7  ;;  %s1051_s28 = scalar_lea.hbm %s1583_s12, 64 }
 0x1ba   : > { %s572_s18 = sshll.u32 %s569_s11, 4  ;;  %s573_s18 = int_to_ptr.hbm [resolvable:$true] %s572_s18 }
 0x1bb   : > { %s1045_s13 = sshra.s32 %s573_s18, 4  ;;  %s1046_s13 = int_to_ptr.hbm [resolvable:$true] %s1045_s13 }
 0x1bc   : > { %s1047_s0 = scalar_lea.hbm %s1046_s13, 32  ;;  %p1052_p4 = scmp.lt.s32.totalorder %s1046_s13, %s1583_s12 }
 0x1bd   : > { %p1048_p11 = scmp.ne.s32.totalorder %s1046_s13, %s1047_s0  ;;  %p1053_p6 = scmp.lt.s32.totalorder %s1051_s28, %s1047_s0 }
 0x1bf   : > { %p1049_p12 = pnand %p1048_p11, %p1350_p1  ;;  %p1054_p0 = por %p1053_p6, %p1052_p4 }
 0x1c1   : > { %p1050_p13 = pneg %p1049_p12 }
 0x1c3   : > { %p1055_p7 = pnand %p1054_p0, %p1050_p13 }
 0x1c5   : > { %1058 = shalt.err (!%p1055_p7)
}
 0x1c6   : > { %s1167_s21 = smov 128   ;;  %s1168_s16 = smov 8  }
 0x1c7   : > { %786 = dma.vmem_to_hbm [thread:$0]  (%p1350_p1), %s571_s20, 512, %s573_s18, %s558_s27, %s1167_s21, %s1167_s21, %s1168_s16  }
 0x1c8 PF: > { %s1584_s10 = sld [smem:[#allocation21_spill]] }
 0x1c9   : > { %s1585_s17 = sld [smem:[#allocation17_spill]] }
 0x1ce   : > { %p806_p9 = scmp.ge.s32.totalorder %s1584_s10, 2 }
 0x1cf   : > { %s587_s9 = sand.u32 1, %s1585_s17  }
 0x1d0   : > { %p802_p3 = pnand %p806_p9, %p1357_p2  ;;  %s588_s30 = scalar_lea.sflag [#allocation5], %s587_s9 }
 0x1d2   : > { %p803_p10 = pneg %p802_p3 }
 0x1d4   : > { %1116 = dma.done.wait (%p803_p10), %s588_s30, 512  }
 0x1d5   : > { %1118 = vsyncadd (%p803_p10), %s588_s30, 4294966784  ;;  %s27_s28 = sadd.s32 1, %s1584_s10   ;;  %s1587_s5 = sld [smem:[#allocation16_spill]] }
 0x1d6   : > { %p24_p5 = scmp.ge.s32.totalorder %s27_s28, 6   ;;  %s1588_s20 = sld [smem:[#allocation24_spill]] }
 0x1d7   : > { %s1589_s25 = sld [smem:[#allocation18_spill]]  ;;  %s1594_s18 = smov %s1125_s19 }
 0x1d8   : > { %s1590_s23 = sld [smem:[#allocation25_spill]]  ;;  %s1596_s21 = smov %s1137_s22 }
 0x1d9   : > { %s1591_s1 = sld [smem:[#allocation20_spill]]  ;;  %s1598_s24 = smov %s1153_s26 }
 0x1da   : > { %s1592_s7 = sld [smem:[#allocation22_spill]] }
 0x1db   : > { %s1593_s27 = sld [smem:[#allocation23_spill]]  ;;  %s1595_s19 = smov %s1587_s5 }
 0x1dc   :  { %26 = sbr.rel (!%p24_p5) target bundleno = 18 (0x12), region = 130 }
 0x1dd   : > { %s1597_s22 = smov %s1589_s25 }
 0x1df   : > { %s1599_s25 = smov %s1591_s1 }
 0x1e0   : > { %s1600_s26 = smov %s1592_s7 }
 0x1e1   :  { %594 = vsyncpa [#allocation4], 1 }
 0x1e2   :  { %596 = vsyncpa [#allocation4 + $0x1], 1 }
 0x1e3   :  { %597 = vsyncpa [#allocation7], 1 }
 0x1e4   :  { %599 = vsyncpa [#allocation7 + $0x1], 1 }
 0x1e5   :  { %600 = vsyncpa [#allocation10], 1 }
 0x1e6   :  { %602 = vsyncpa [#allocation10 + $0x1], 1 }
 0x1e7   :  { %603 = vsyncpa [#allocation5], 1 }
 0x1e8   :  { %605 = vsyncpa [#allocation5 + $0x1], 1 }

</bundles_post_ra>
